<compile_context>
chip_gen: v7x
topology: tpu7x:2x2x1
jax: 0.10.0
libtpu: 0.0.40
codegen_flags: <defaults>
</compile_context>

<pallas_src>
import functools

import jax
import jax.numpy as jnp
import numpy as np
from jax import lax
from jax.experimental import pallas as pl
from jax.experimental.pallas import tpu as pltpu


def _attention_kernel(obs_ref, state_ref, wq_ref, wk_ref, wv_ref, out_ref, *,
                      heads, emb_size, b_tile, seq_len, compute_dtype):
    """One grid step = B_TILE batch elements, all heads computed in-body.

    obs_ref   : (b_tile, t, observe_size)
    state_ref : (b_tile, t, state_size)
    wq_ref    : (observe_size, heads*e)  head-stacked, pre-scaled by 1/sqrt(e)
    wk_ref    : (state_size,  heads*e)
    wv_ref    : (state_size,  heads*e)   columns pre-scaled by merger coeffs
    out_ref   : (b_tile, t, e)
    """
    e = emb_size
    t = seq_len

    # Flatten the batch tile into the M dim of the projection matmuls.
    obs = obs_ref[...].reshape(b_tile * t, -1).astype(compute_dtype)
    st = state_ref[...].reshape(b_tile * t, -1).astype(compute_dtype)

    # Head-stacked projections: one lane-dense matmul each, f32 accumulation.
    q_all = jnp.dot(obs, wq_ref[...], preferred_element_type=jnp.float32)
    k_all = jnp.dot(st, wk_ref[...], preferred_element_type=jnp.float32)
    v_all = jnp.dot(st, wv_ref[...], preferred_element_type=jnp.float32)

    # Small static loops over the batch tile and heads (scores / softmax are
    # intrinsically per (batch, head)). Softmax math stays in f32; only matmul
    # operands are cast to compute_dtype.
    for bi in range(b_tile):
        q_b = q_all[bi * t:(bi + 1) * t]          # (t, heads*e)
        k_b = k_all[bi * t:(bi + 1) * t]
        v_b = v_all[bi * t:(bi + 1) * t]
        acc = jnp.zeros((t, e), jnp.float32)
        for h in range(heads):
            q = q_b[:, h * e:(h + 1) * e].astype(compute_dtype)   # (t, e)
            k = k_b[:, h * e:(h + 1) * e].astype(compute_dtype)   # (t, e)
            v = v_b[:, h * e:(h + 1) * e].astype(compute_dtype)   # (t, e)

            # q @ k^T without materializing a transpose.
            s = lax.dot_general(q, k, (((1,), (1,)), ((), ())),
                                preferred_element_type=jnp.float32)  # (t, t)
            s = s - jnp.max(s, axis=-1, keepdims=True)
            p = jnp.exp(s)
            p = p * pl.reciprocal(jnp.sum(p, axis=-1, keepdims=True),
                                  approx=True)

            # Merger coefficient already folded into v's columns; just sum.
            acc = acc + jnp.dot(p.astype(compute_dtype), v,
                                preferred_element_type=jnp.float32)

        out_ref[bi] = acc.astype(out_ref.dtype)


def _pick_b_tile(b):
    """Largest divisor of b that is <= 8 while keeping >= 2 grid steps."""
    best = 1
    for cand in range(1, min(b, 8) + 1):
        if b % cand == 0 and (b // cand >= 2 or b == 1):
            best = cand
    return best


def prepare_params(wq, wk, wv, merger_weight, heads, emb_size,
                   matmul_dtype=jnp.float32):
    """One-time (init-time) parameter prep.

    wq            : (heads*e, observe_size)  PyTorch Linear weight layout
    wk, wv        : (heads*e, state_size)
    merger_weight : (1, heads, e)
    Returns head-stacked slabs (in_features, heads*e) with the attention scale
    folded into wq and the merger softmax coefficients folded into wv.
    """
    e = emb_size
    scale = 1.0 / float(np.sqrt(e))
    wq_s = (jnp.transpose(wq).astype(jnp.float32) * scale)     # (obs_in, h*e)
    wk_s = jnp.transpose(wk).astype(jnp.float32)                # (st_in, h*e)
    if heads > 1:
        coeff = jax.nn.softmax(merger_weight.astype(jnp.float32), axis=1)[0]
    else:
        coeff = jnp.ones((1, e), jnp.float32)                   # Merger == id
    mw_flat = coeff.reshape(heads * e)
    wv_s = jnp.transpose(wv).astype(jnp.float32) * mw_flat[None, :]
    return (wq_s.astype(matmul_dtype), wk_s.astype(matmul_dtype),
            wv_s.astype(matmul_dtype))


def observe_state_attention1(observe, state, wq_s, wk_s, wv_s, heads, emb_size,
                             *, b_tile=None, compute_dtype=None):
    """Pallas forward pass.

    observe : (b, t, observe_size) float32
    state   : (b, t, state_size)   float32
    wq_s/wk_s/wv_s : prepared slabs from `prepare_params`
    returns : (b*t, emb_size) float32
    """
    b, t, observe_size = observe.shape
    _, _, state_size = state.shape
    e = emb_size

    if compute_dtype is None:
        compute_dtype = wq_s.dtype
    if b_tile is None:
        b_tile = _pick_b_tile(b)
    assert b % b_tile == 0, (b, b_tile)
    grid = (b // b_tile,)

    kernel = functools.partial(_attention_kernel, heads=heads, emb_size=e,
                               b_tile=b_tile, seq_len=t,
                               compute_dtype=compute_dtype)

    out = pl.pallas_call(
        kernel,
        out_shape=jax.ShapeDtypeStruct((b, t, e), jnp.float32),
        grid_spec=pltpu.PrefetchScalarGridSpec(
            num_scalar_prefetch=0,
            grid=grid,
            in_specs=[
                pl.BlockSpec((b_tile, t, observe_size), lambda i: (i, 0, 0)),
                pl.BlockSpec((b_tile, t, state_size), lambda i: (i, 0, 0)),
                pl.BlockSpec((observe_size, heads * e), lambda i: (0, 0)),
                pl.BlockSpec((state_size, heads * e), lambda i: (0, 0)),
                pl.BlockSpec((state_size, heads * e), lambda i: (0, 0)),
            ],
            out_specs=pl.BlockSpec((b_tile, t, e), lambda i: (i, 0, 0)),
        ),
        compiler_params=pltpu.CompilerParams(
            dimension_semantics=("parallel",)),
    )(observe, state, wq_s, wk_s, wv_s)

    return out.reshape(b * t, e)


def _reference_forward(observe, state, wq, wk, wv, merger_weight, heads, e):
    """Pure-JAX replica of the PyTorch module for validation."""
    b, t, _ = observe.shape
    q = (observe @ wq.T).reshape(b, t, heads, e)
    k = (state @ wk.T).reshape(b, t, heads, e)
    v = (state @ wv.T).reshape(b, t, heads, e)
    q = jnp.transpose(q, (0, 2, 1, 3)) / e ** 0.25
    k = jnp.transpose(k, (0, 2, 1, 3)) / e ** 0.25
    v = jnp.transpose(v, (0, 2, 1, 3))
    dot = jax.nn.softmax(q @ jnp.swapaxes(k, -1, -2), axis=-1)   # (b,h,t,t)
    out = dot @ v                                                # (b,h,t,e)
    out = jnp.transpose(out, (0, 2, 1, 3)).reshape(b * t, heads, e)
    if heads > 1:
        coeff = jax.nn.softmax(merger_weight, axis=1)
        return jnp.sum(coeff * out, axis=1)
    return out[:, 0, :]


if __name__ == "__main__":
    # Small shapes consistent with the module's forward.
    batch, seq = 4, 8
    observe_size, state_size = 16, 16
    heads, emb_size = 2, 32

    key = jax.random.PRNGKey(0)
    k_obs, k_state, k_q, k_k, k_v = jax.random.split(key, 5)

    observe = jax.random.normal(k_obs, (batch, seq, observe_size), jnp.float32)
    state = jax.random.normal(k_state, (batch, seq, state_size), jnp.float32)

    # Deterministic parameter init (PyTorch Linear weight layout: [out, in]).
    wq = jax.random.normal(k_q, (heads * emb_size, observe_size), jnp.float32) * 0.1
    wk = jax.random.normal(k_k, (heads * emb_size, state_size), jnp.float32) * 0.1
    wv = jax.random.normal(k_v, (heads * emb_size, state_size), jnp.float32) * 0.1
    # Merger weight initialized to 1.0 as in the module __init__.
    merger_weight = jnp.ones((1, heads, emb_size), jnp.float32)

    ref = _reference_forward(observe, state, wq, wk, wv, merger_weight,
                             heads, emb_size)
    ref = jax.block_until_ready(ref)

    # --- f32 matmul path (tight check) ---
    params_f32 = prepare_params(wq, wk, wv, merger_weight, heads, emb_size,
                                matmul_dtype=jnp.float32)
    out_f32 = observe_state_attention1(observe, state, *params_f32,
                                       heads, emb_size)
    out_f32 = jax.block_until_ready(out_f32)
    assert out_f32.shape == (batch * seq, emb_size), out_f32.shape
    np.testing.assert_allclose(np.asarray(out_f32), np.asarray(ref),
                               rtol=2e-3, atol=2e-3)

    # --- bf16 matmul path (production/perf default; looser tolerance) ---
    params_bf16 = prepare_params(wq, wk, wv, merger_weight, heads, emb_size,
                                 matmul_dtype=jnp.bfloat16)
    out_bf16 = observe_state_attention1(observe, state, *params_bf16,
                                        heads, emb_size)
    out_bf16 = jax.block_until_ready(out_bf16)
    np.testing.assert_allclose(np.asarray(out_bf16), np.asarray(ref),
                               rtol=2e-2, atol=5e-3)

    print("KERNEL_OK")
</pallas_src>

<mosaic_0001>
module attributes {stable_mosaic.version = 11 : i64} {
  func.func @_attention_kernel(%arg0: i32, %arg1: memref<2x8x16xf32, #tpu.memory_space<vmem>>, %arg2: memref<2x8x16xf32, #tpu.memory_space<vmem>>, %arg3: memref<16x64xf32, #tpu.memory_space<vmem>>, %arg4: memref<16x64xf32, #tpu.memory_space<vmem>>, %arg5: memref<16x64xf32, #tpu.memory_space<vmem>>, %arg6: memref<2x8x32xf32, #tpu.memory_space<vmem>>) attributes {dimension_semantics = [#tpu.dimension_semantics<parallel>], iteration_bounds = array<i64: 2>, scalar_prefetch = 0 : i64, scratch_operands = 0 : i64, tpu.core_type = #tpu.core_type<tc>, window_params = [{transform_indices = @transform_0, window_bounds = array<i64: 2, 8, 16>}, {transform_indices = @transform_1, window_bounds = array<i64: 2, 8, 16>}, {pipeline_mode = #tpu.pipeline_mode<synchronous>, transform_indices = @transform_2, window_bounds = array<i64: 16, 64>}, {pipeline_mode = #tpu.pipeline_mode<synchronous>, transform_indices = @transform_3, window_bounds = array<i64: 16, 64>}, {pipeline_mode = #tpu.pipeline_mode<synchronous>, transform_indices = @transform_4, window_bounds = array<i64: 16, 64>}, {transform_indices = @transform_5, window_bounds = array<i64: 2, 8, 32>}]} {
    %c0 = arith.constant 0 : index
    %c0_0 = arith.constant 0 : index
    %c0_1 = arith.constant 0 : index
    %0 = vector.load %arg1[%c0, %c0_0, %c0_1] : memref<2x8x16xf32, #tpu.memory_space<vmem>>, vector<2x8x16xf32>
    %1 = vector.shape_cast %0 : vector<2x8x16xf32> to vector<16x16xf32>
    %c0_2 = arith.constant 0 : index
    %c0_3 = arith.constant 0 : index
    %c0_4 = arith.constant 0 : index
    %2 = vector.load %arg2[%c0_2, %c0_3, %c0_4] : memref<2x8x16xf32, #tpu.memory_space<vmem>>, vector<2x8x16xf32>
    %3 = vector.shape_cast %2 : vector<2x8x16xf32> to vector<16x16xf32>
    %c0_5 = arith.constant 0 : index
    %c0_6 = arith.constant 0 : index
    %4 = vector.load %arg3[%c0_5, %c0_6] : memref<16x64xf32, #tpu.memory_space<vmem>>, vector<16x64xf32>
    %cst = arith.constant dense<0.000000e+00> : vector<16x64xf32>
    %5 = tpu.matmul %1, %4, %cst {dimension_numbers = #tpu.dot_dimension_numbers<[1], [0], [0], [1], [0, 0, 1, 1], [], []>} : vector<16x16xf32>, vector<16x64xf32>, vector<16x64xf32> -> vector<16x64xf32>
    %c0_7 = arith.constant 0 : index
    %c0_8 = arith.constant 0 : index
    %6 = vector.load %arg4[%c0_7, %c0_8] : memref<16x64xf32, #tpu.memory_space<vmem>>, vector<16x64xf32>
    %cst_9 = arith.constant dense<0.000000e+00> : vector<16x64xf32>
    %7 = tpu.matmul %3, %6, %cst_9 {dimension_numbers = #tpu.dot_dimension_numbers<[1], [0], [0], [1], [0, 0, 1, 1], [], []>} : vector<16x16xf32>, vector<16x64xf32>, vector<16x64xf32> -> vector<16x64xf32>
    %c0_10 = arith.constant 0 : index
    %c0_11 = arith.constant 0 : index
    %8 = vector.load %arg5[%c0_10, %c0_11] : memref<16x64xf32, #tpu.memory_space<vmem>>, vector<16x64xf32>
    %cst_12 = arith.constant dense<0.000000e+00> : vector<16x64xf32>
    %9 = tpu.matmul %3, %8, %cst_12 {dimension_numbers = #tpu.dot_dimension_numbers<[1], [0], [0], [1], [0, 0, 1, 1], [], []>} : vector<16x16xf32>, vector<16x64xf32>, vector<16x64xf32> -> vector<16x64xf32>
    %10 = vector.extract_strided_slice %5 {offsets = [0, 0], sizes = [8, 64], strides = [1, 1]} : vector<16x64xf32> to vector<8x64xf32>
    %11 = vector.extract_strided_slice %7 {offsets = [0, 0], sizes = [8, 64], strides = [1, 1]} : vector<16x64xf32> to vector<8x64xf32>
    %12 = vector.extract_strided_slice %9 {offsets = [0, 0], sizes = [8, 64], strides = [1, 1]} : vector<16x64xf32> to vector<8x64xf32>
    %cst_13 = arith.constant 0.000000e+00 : f32
    %13 = vector.broadcast %cst_13 : f32 to vector<8x32xf32>
    %14 = vector.extract_strided_slice %10 {offsets = [0, 0], sizes = [8, 32], strides = [1, 1]} : vector<8x64xf32> to vector<8x32xf32>
    %15 = vector.extract_strided_slice %11 {offsets = [0, 0], sizes = [8, 32], strides = [1, 1]} : vector<8x64xf32> to vector<8x32xf32>
    %16 = vector.extract_strided_slice %12 {offsets = [0, 0], sizes = [8, 32], strides = [1, 1]} : vector<8x64xf32> to vector<8x32xf32>
    %cst_14 = arith.constant dense<0.000000e+00> : vector<8x8xf32>
    %17 = tpu.matmul %14, %15, %cst_14 {dimension_numbers = #tpu.dot_dimension_numbers<[1], [1], [0], [0], [0, 0, 1, 0], [], []>} : vector<8x32xf32>, vector<8x32xf32>, vector<8x8xf32> -> vector<8x8xf32>
    %cst_15 = arith.constant dense<0xFF800000> : vector<8xf32>
    %18 = vector.multi_reduction <maximumf>, %17, %cst_15 [1] : vector<8x8xf32> to vector<8xf32>
    %19 = vector.shape_cast %18 : vector<8xf32> to vector<8x1xf32>
    %20 = vector.broadcast %19 : vector<8x1xf32> to vector<8x8xf32>
    %21 = arith.subf %17, %20 : vector<8x8xf32>
    %22 = math.exp %21 : vector<8x8xf32>
    %cst_16 = arith.constant dense<0.000000e+00> : vector<8xf32>
    %23 = vector.multi_reduction <add>, %22, %cst_16 [1] : vector<8x8xf32> to vector<8xf32>
    %24 = vector.shape_cast %23 : vector<8xf32> to vector<8x1xf32>
    %25 = tpu.reciprocal %24 {approx = true} : vector<8x1xf32> -> vector<8x1xf32>
    %26 = vector.broadcast %25 : vector<8x1xf32> to vector<8x8xf32>
    %27 = arith.mulf %22, %26 : vector<8x8xf32>
    %cst_17 = arith.constant dense<0.000000e+00> : vector<8x32xf32>
    %28 = tpu.matmul %27, %16, %cst_17 {dimension_numbers = #tpu.dot_dimension_numbers<[1], [0], [0], [1], [0, 0, 1, 1], [], []>} : vector<8x8xf32>, vector<8x32xf32>, vector<8x32xf32> -> vector<8x32xf32>
    %29 = arith.addf %13, %28 : vector<8x32xf32>
    %30 = vector.extract_strided_slice %10 {offsets = [0, 32], sizes = [8, 32], strides = [1, 1]} : vector<8x64xf32> to vector<8x32xf32>
    %31 = vector.extract_strided_slice %11 {offsets = [0, 32], sizes = [8, 32], strides = [1, 1]} : vector<8x64xf32> to vector<8x32xf32>
    %32 = vector.extract_strided_slice %12 {offsets = [0, 32], sizes = [8, 32], strides = [1, 1]} : vector<8x64xf32> to vector<8x32xf32>
    %cst_18 = arith.constant dense<0.000000e+00> : vector<8x8xf32>
    %33 = tpu.matmul %30, %31, %cst_18 {dimension_numbers = #tpu.dot_dimension_numbers<[1], [1], [0], [0], [0, 0, 1, 0], [], []>} : vector<8x32xf32>, vector<8x32xf32>, vector<8x8xf32> -> vector<8x8xf32>
    %cst_19 = arith.constant dense<0xFF800000> : vector<8xf32>
    %34 = vector.multi_reduction <maximumf>, %33, %cst_19 [1] : vector<8x8xf32> to vector<8xf32>
    %35 = vector.shape_cast %34 : vector<8xf32> to vector<8x1xf32>
    %36 = vector.broadcast %35 : vector<8x1xf32> to vector<8x8xf32>
    %37 = arith.subf %33, %36 : vector<8x8xf32>
    %38 = math.exp %37 : vector<8x8xf32>
    %cst_20 = arith.constant dense<0.000000e+00> : vector<8xf32>
    %39 = vector.multi_reduction <add>, %38, %cst_20 [1] : vector<8x8xf32> to vector<8xf32>
    %40 = vector.shape_cast %39 : vector<8xf32> to vector<8x1xf32>
    %41 = tpu.reciprocal %40 {approx = true} : vector<8x1xf32> -> vector<8x1xf32>
    %42 = vector.broadcast %41 : vector<8x1xf32> to vector<8x8xf32>
    %43 = arith.mulf %38, %42 : vector<8x8xf32>
    %cst_21 = arith.constant dense<0.000000e+00> : vector<8x32xf32>
    %44 = tpu.matmul %43, %32, %cst_21 {dimension_numbers = #tpu.dot_dimension_numbers<[1], [0], [0], [1], [0, 0, 1, 1], [], []>} : vector<8x8xf32>, vector<8x32xf32>, vector<8x32xf32> -> vector<8x32xf32>
    %45 = arith.addf %29, %44 : vector<8x32xf32>
    %c0_22 = arith.constant 0 : index
    %c0_23 = arith.constant 0 : index
    %c0_24 = arith.constant 0 : index
    %46 = vector.load %arg6[%c0_22, %c0_23, %c0_24] : memref<2x8x32xf32, #tpu.memory_space<vmem>>, vector<1x8x32xf32>
    %47 = vector.shape_cast %46 : vector<1x8x32xf32> to vector<8x32xf32>
    %48 = vector.shape_cast %45 : vector<8x32xf32> to vector<1x8x32xf32>
    tpu.vector_store %arg6[%c0_22, %c0_23, %c0_24], %48 {strides = array<i32>} : memref<2x8x32xf32, #tpu.memory_space<vmem>>, vector<1x8x32xf32>,
    %49 = vector.extract_strided_slice %5 {offsets = [8, 0], sizes = [8, 64], strides = [1, 1]} : vector<16x64xf32> to vector<8x64xf32>
    %50 = vector.extract_strided_slice %7 {offsets = [8, 0], sizes = [8, 64], strides = [1, 1]} : vector<16x64xf32> to vector<8x64xf32>
    %51 = vector.extract_strided_slice %9 {offsets = [8, 0], sizes = [8, 64], strides = [1, 1]} : vector<16x64xf32> to vector<8x64xf32>
    %cst_25 = arith.constant 0.000000e+00 : f32
    %52 = vector.broadcast %cst_25 : f32 to vector<8x32xf32>
    %53 = vector.extract_strided_slice %49 {offsets = [0, 0], sizes = [8, 32], strides = [1, 1]} : vector<8x64xf32> to vector<8x32xf32>
    %54 = vector.extract_strided_slice %50 {offsets = [0, 0], sizes = [8, 32], strides = [1, 1]} : vector<8x64xf32> to vector<8x32xf32>
    %55 = vector.extract_strided_slice %51 {offsets = [0, 0], sizes = [8, 32], strides = [1, 1]} : vector<8x64xf32> to vector<8x32xf32>
    %cst_26 = arith.constant dense<0.000000e+00> : vector<8x8xf32>
    %56 = tpu.matmul %53, %54, %cst_26 {dimension_numbers = #tpu.dot_dimension_numbers<[1], [1], [0], [0], [0, 0, 1, 0], [], []>} : vector<8x32xf32>, vector<8x32xf32>, vector<8x8xf32> -> vector<8x8xf32>
    %cst_27 = arith.constant dense<0xFF800000> : vector<8xf32>
    %57 = vector.multi_reduction <maximumf>, %56, %cst_27 [1] : vector<8x8xf32> to vector<8xf32>
    %58 = vector.shape_cast %57 : vector<8xf32> to vector<8x1xf32>
    %59 = vector.broadcast %58 : vector<8x1xf32> to vector<8x8xf32>
    %60 = arith.subf %56, %59 : vector<8x8xf32>
    %61 = math.exp %60 : vector<8x8xf32>
    %cst_28 = arith.constant dense<0.000000e+00> : vector<8xf32>
    %62 = vector.multi_reduction <add>, %61, %cst_28 [1] : vector<8x8xf32> to vector<8xf32>
    %63 = vector.shape_cast %62 : vector<8xf32> to vector<8x1xf32>
    %64 = tpu.reciprocal %63 {approx = true} : vector<8x1xf32> -> vector<8x1xf32>
    %65 = vector.broadcast %64 : vector<8x1xf32> to vector<8x8xf32>
    %66 = arith.mulf %61, %65 : vector<8x8xf32>
    %cst_29 = arith.constant dense<0.000000e+00> : vector<8x32xf32>
    %67 = tpu.matmul %66, %55, %cst_29 {dimension_numbers = #tpu.dot_dimension_numbers<[1], [0], [0], [1], [0, 0, 1, 1], [], []>} : vector<8x8xf32>, vector<8x32xf32>, vector<8x32xf32> -> vector<8x32xf32>
    %68 = arith.addf %52, %67 : vector<8x32xf32>
    %69 = vector.extract_strided_slice %49 {offsets = [0, 32], sizes = [8, 32], strides = [1, 1]} : vector<8x64xf32> to vector<8x32xf32>
    %70 = vector.extract_strided_slice %50 {offsets = [0, 32], sizes = [8, 32], strides = [1, 1]} : vector<8x64xf32> to vector<8x32xf32>
    %71 = vector.extract_strided_slice %51 {offsets = [0, 32], sizes = [8, 32], strides = [1, 1]} : vector<8x64xf32> to vector<8x32xf32>
    %cst_30 = arith.constant dense<0.000000e+00> : vector<8x8xf32>
    %72 = tpu.matmul %69, %70, %cst_30 {dimension_numbers = #tpu.dot_dimension_numbers<[1], [1], [0], [0], [0, 0, 1, 0], [], []>} : vector<8x32xf32>, vector<8x32xf32>, vector<8x8xf32> -> vector<8x8xf32>
    %cst_31 = arith.constant dense<0xFF800000> : vector<8xf32>
    %73 = vector.multi_reduction <maximumf>, %72, %cst_31 [1] : vector<8x8xf32> to vector<8xf32>
    %74 = vector.shape_cast %73 : vector<8xf32> to vector<8x1xf32>
    %75 = vector.broadcast %74 : vector<8x1xf32> to vector<8x8xf32>
    %76 = arith.subf %72, %75 : vector<8x8xf32>
    %77 = math.exp %76 : vector<8x8xf32>
    %cst_32 = arith.constant dense<0.000000e+00> : vector<8xf32>
    %78 = vector.multi_reduction <add>, %77, %cst_32 [1] : vector<8x8xf32> to vector<8xf32>
    %79 = vector.shape_cast %78 : vector<8xf32> to vector<8x1xf32>
    %80 = tpu.reciprocal %79 {approx = true} : vector<8x1xf32> -> vector<8x1xf32>
    %81 = vector.broadcast %80 : vector<8x1xf32> to vector<8x8xf32>
    %82 = arith.mulf %77, %81 : vector<8x8xf32>
    %cst_33 = arith.constant dense<0.000000e+00> : vector<8x32xf32>
    %83 = tpu.matmul %82, %71, %cst_33 {dimension_numbers = #tpu.dot_dimension_numbers<[1], [0], [0], [1], [0, 0, 1, 1], [], []>} : vector<8x8xf32>, vector<8x32xf32>, vector<8x32xf32> -> vector<8x32xf32>
    %84 = arith.addf %68, %83 : vector<8x32xf32>
    %c1 = arith.constant 1 : index
    %c0_34 = arith.constant 0 : index
    %c0_35 = arith.constant 0 : index
    %85 = vector.load %arg6[%c1, %c0_34, %c0_35] : memref<2x8x32xf32, #tpu.memory_space<vmem>>, vector<1x8x32xf32>
    %86 = vector.shape_cast %85 : vector<1x8x32xf32> to vector<8x32xf32>
    %87 = vector.shape_cast %84 : vector<8x32xf32> to vector<1x8x32xf32>
    tpu.vector_store %arg6[%c1, %c0_34, %c0_35], %87 {strides = array<i32>} : memref<2x8x32xf32, #tpu.memory_space<vmem>>, vector<1x8x32xf32>,
    return
  }
  func.func @transform_0(%arg0: i32) -> (i32, i32, i32) {
    %c0_i32 = arith.constant 0 : i32
    %c0_i32_0 = arith.constant 0 : i32
    %c0_i32_1 = arith.constant 0 : i32
    return %arg0, %c0_i32, %c0_i32_0 : i32, i32, i32
  }
  func.func @transform_1(%arg0: i32) -> (i32, i32, i32) {
    %c0_i32 = arith.constant 0 : i32
    %c0_i32_0 = arith.constant 0 : i32
    %c0_i32_1 = arith.constant 0 : i32
    return %arg0, %c0_i32, %c0_i32_0 : i32, i32, i32
  }
  func.func @transform_2(%arg0: i32) -> (i32, i32) {
    %c0_i32 = arith.constant 0 : i32
    %c0_i32_0 = arith.constant 0 : i32
    %c0_i32_1 = arith.constant 0 : i32
    return %c0_i32, %c0_i32_0 : i32, i32
  }
  func.func @transform_3(%arg0: i32) -> (i32, i32) {
    %c0_i32 = arith.constant 0 : i32
    %c0_i32_0 = arith.constant 0 : i32
    %c0_i32_1 = arith.constant 0 : i32
    return %c0_i32, %c0_i32_0 : i32, i32
  }
  func.func @transform_4(%arg0: i32) -> (i32, i32) {
    %c0_i32 = arith.constant 0 : i32
    %c0_i32_0 = arith.constant 0 : i32
    %c0_i32_1 = arith.constant 0 : i32
    return %c0_i32, %c0_i32_0 : i32, i32
  }
  func.func @transform_5(%arg0: i32) -> (i32, i32, i32) {
    %c0_i32 = arith.constant 0 : i32
    %c0_i32_0 = arith.constant 0 : i32
    %c0_i32_1 = arith.constant 0 : i32
    return %arg0, %c0_i32, %c0_i32_0 : i32, i32, i32
  }
}

</mosaic_0001>

<bundles_post_ra>
// kernel: tpu_custom_call.1
= control target key start
LH: loop header
LB: loop body
LE: loop exit
PB: predicated region body
PF: predicated region fallthrough
CT: control target
= control target key end

     0   :  { %s2283_s0 = inlined_call_operand.hbm [shape: f32[4,8,16], index: 0, kind: input, shape index: {}]   ;;  %s2284_s1 = inlined_call_operand.hbm [shape: f32[4,8,16], index: 1, kind: input, shape index: {}]   ;;  %s2285_s2 = inlined_call_operand.hbm [shape: f32[16,64], index: 2, kind: input, shape index: {}]   ;;  %s2286_s3 = inlined_call_operand.hbm [shape: f32[16,64], index: 3, kind: input, shape index: {}]   ;;  %s2287_s4 = inlined_call_operand.hbm [shape: f32[16,64], index: 4, kind: input, shape index: {}]   ;;  %s2288_s5 = inlined_call_operand.hbm [shape: f32[4,8,32], index: 5, kind: output, shape index: {}]  }
   0x1   :  { %2296 = sst [smem:[#allocation17_spill]] %s2283_s0 }
   0x2   :  { %2297 = sst [smem:[#allocation18_spill]] %s2285_s2 }
   0x3   :  { %2298 = sst [smem:[#allocation19_spill]] %s2286_s3 }
   0x4   :  { %2299 = sst [smem:[#allocation20_spill]] %s2287_s4 }
   0x5   :  { %10 = vsyncpa [#allocation3], 0 }
   0x6   :  { %12 = vsyncpa [#allocation3 + $0x1], 0 }
   0x7   :  { %13 = vsyncpa [#allocation6], 0 }
   0x8   :  { %15 = vsyncpa [#allocation6 + $0x1], 0 }
   0x9   :  { %16 = vsyncpa [#allocation9], 0 }
   0xa   :  { %17 = vsyncpa [#allocation4], 0 }
   0xb   :  { %19 = vsyncpa [#allocation4 + $0x1], 0  ;;  %s1895_s18 = smov 0   ;;  %s1897_s19 = smov 0  }
   0xc   :  { %s1899_s20 = smov 0   ;;  %s1901_s21 = smov 0  }
   0xd LB: > { %s1916_s22 = sadd.s32 4294967295, %s1850_s21   ;;  %s1372_s23 = sadd.s32 4294967294, %s1850_s21   ;;  %s1850_s21 = sphi %s1901_s21, %s2325_s21   ;;  %s1846_s20 = sphi %s1899_s20, %s2324_s20   ;;  %s1842_s19 = sphi %s1897_s19, %s2323_s19   ;;  %s1838_s18 = sphi %s1895_s18, %s2322_s18  }
   0xe   : > { %p45_p0 = scmp.ne.s32.totalorder %s1842_s19, %s1838_s18  ;;  %p2289_p1 = scmp.eq.s32.totalorder %s1916_s22, 0 }
   0xf   : > { %p164_p3 = scmp.eq.s32.totalorder %s1372_s23, 1  ;;  %p1373_p5 = scmp.ge.s32.totalorder %s1850_s21, 1 }
  0x10   : > { %p1925_p4 = por %p2289_p1, %p45_p0  ;;  %p171_p7 = scmp.lt.s32.totalorder %s1850_s21, 3 }
  0x11   : > { %p1930_p6 = por %p164_p3, %p45_p0  ;;  %s1852_s27 = smov [#allocation7]  }
  0x12   : > { %s2300_s24 = scalar_select %p1925_p4, 1, 0 }
  0x13   : > { %s2301_s25 = scalar_select %p1930_p6, 1, 0 }
  0x14   : > { %p1935_p8 = pnand %p1373_p5, %p171_p7  ;;  %s183_s28 = sshll.u32 %s1852_s27, 4  ;;  %s1939_s28 = int_to_ptr.vmem [resolvable:$true] %s183_s28 }
  0x15   : > { %s1853_s30 = smov [#allocation8]   ;;  %s1854_s7 = smov [#allocation10]  }
  0x16   : > { %s2302_s26 = scalar_select %p1935_p8, 1, 0 }
  0x17   : > { %p1541_p9 = pneg %p1935_p8  ;;  %s196_s6 = sshll.u32 %s1853_s30, 4  ;;  %s1950_s6 = int_to_ptr.vmem [resolvable:$true] %s196_s6 }
  0x18   : > { %s1952_s8 = sshll.u32 %s1854_s7, 4  ;;  %s2304_s2 = sld [smem:[#allocation18_spill]]  ;;  %s210_s8 = int_to_ptr.vmem [resolvable:$true] %s1952_s8 }
  0x19   : > { %p1946_p11 = pnand %p1541_p9, %p2289_p1 }
  0x1b   : > { %p1962_p13 = pneg %p1946_p11 }
  0x1e   : > { %s1628_s11 = scalar_lea.hbm %s2304_s2, 256 }
  0x1f   : > { %p1629_p12 = scmp.ne.s32.totalorder %s2304_s2, %s1628_s11  ;;  %p1635_p5 = scmp.lt.u32.totalorder %s1628_s11, %s2304_s2 }
  0x21   : > { %p1631_p0 = pnand %p1962_p13, %p1629_p12 }
  0x23   : > { %p1632_p3 = pneg %p1631_p0 }
  0x25   : > { %p1637_p7 = pnand %p1635_p5, %p1632_p3 }
  0x27   : > { %1640 = shalt.err (!%p1637_p7)
}
  0x28   : > { %s1641_s17 = scalar_lea.vmem %s1939_s28, 256  ;;  %p1649_p2 = scmp.lt.s32.totalorder %s1939_s28, %s1939_s28 }
  0x29   : > { %p1642_p9 = scmp.ne.s32.totalorder %s1939_s28, %s1641_s17  ;;  %p1650_p6 = scmp.lt.s32.totalorder %s1641_s17, %s1641_s17 }
  0x2b   : > { %p1644_p10 = pnand %p1642_p9, %p1962_p13  ;;  %p1651_p12 = por %p1650_p6, %p1649_p2 }
  0x2d   : > { %p1645_p1 = pneg %p1644_p10 }
  0x2f   : > { %p1652_p0 = pnand %p1651_p12, %p1645_p1 }
  0x31   : > { %1655 = shalt.err (!%p1652_p0)
}
  0x32   : > { %s2292_s23 = smov 128   ;;  %s2294_s27 = smov 8  }
  0x33   : > { %1544 = dma.hbm_to_vmem [thread:$0]  (!%p1946_p11), %s2304_s2, 256, %s1939_s28, [#allocation6], %s2292_s23, %s2292_s23, %s2294_s27  }
  0x34   : > { %s2306_s3 = sld [smem:[#allocation19_spill]] }
  0x3a   : > { %s1656_s11 = scalar_lea.hbm %s2306_s3, 256 }
  0x3b   : > { %p1657_p1 = scmp.ne.s32.totalorder %s2306_s3, %s1656_s11  ;;  %p1663_p10 = scmp.lt.u32.totalorder %s1656_s11, %s2306_s3 }
  0x3d   : > { %p1659_p2 = pnand %p1657_p1, %p1962_p13 }
  0x3f   : > { %p1660_p6 = pneg %p1659_p2 }
  0x41   : > { %p1665_p3 = pnand %p1663_p10, %p1660_p6 }
  0x43   : > { %1668 = shalt.err (!%p1665_p3)
}
  0x44   : > { %s1669_s28 = scalar_lea.vmem %s1950_s6, 256  ;;  %p1677_p12 = scmp.lt.s32.totalorder %s1950_s6, %s1950_s6 }
  0x45   : > { %p1670_p5 = scmp.ne.s32.totalorder %s1950_s6, %s1669_s28  ;;  %p1678_p0 = scmp.lt.s32.totalorder %s1669_s28, %s1669_s28 }
  0x47   : > { %p1672_p7 = pnand %p1670_p5, %p1962_p13  ;;  %p1679_p1 = por %p1678_p0, %p1677_p12 }
  0x49   : > { %p1673_p9 = pneg %p1672_p7 }
  0x4b   : > { %p1680_p2 = pnand %p1679_p1, %p1673_p9 }
  0x4d   : > { %1683 = shalt.err (!%p1680_p2)
}
  0x4e   : > { %1547 = dma.hbm_to_vmem [thread:$0]  (!%p1946_p11), %s2306_s3, 256, %s1950_s6, [#allocation9], %s2292_s23, %s2292_s23, %s2294_s27  }
  0x4f   : > { %s2307_s4 = sld [smem:[#allocation20_spill]] }
  0x55   : > { %s1684_s10 = scalar_lea.hbm %s2307_s4, 256 }
  0x56   : > { %p1685_p6 = scmp.ne.s32.totalorder %s2307_s4, %s1684_s10  ;;  %p1691_p5 = scmp.lt.u32.totalorder %s1684_s10, %s2307_s4 }
  0x58   : > { %p1687_p10 = pnand %p1685_p6, %p1962_p13 }
  0x5a   : > { %p1688_p3 = pneg %p1687_p10 }
  0x5c   : > { %p1693_p7 = pnand %p1691_p5, %p1688_p3 }
  0x5e   : > { %1696 = shalt.err (!%p1693_p7)
}
  0x5f   : > { %s1697_s16 = scalar_lea.vmem %s210_s8, 256  ;;  %p1705_p1 = scmp.lt.s32.totalorder %s210_s8, %s210_s8 }
  0x60   : > { %p1698_p9 = scmp.ne.s32.totalorder %s210_s8, %s1697_s16  ;;  %p1706_p2 = scmp.lt.s32.totalorder %s1697_s16, %s1697_s16 }
  0x62   : > { %p1700_p12 = pnand %p1698_p9, %p1962_p13  ;;  %p1707_p4 = por %p1706_p2, %p1705_p1 }
  0x64   : > { %p1701_p0 = pneg %p1700_p12 }
  0x66   : > { %p1708_p8 = pnand %p1707_p4, %p1701_p0 }
  0x68   : > { %1711 = shalt.err (!%p1708_p8)
}
  0x69   : > { %1550 = dma.hbm_to_vmem [thread:$0]  (!%p1946_p11), %s2307_s4, 256, %s210_s8, [#allocation9], %s2292_s23, %s2292_s23, %s2294_s27  }
  0x6a   : > { %s2035_s14 = sadd.s32 1, %s1850_s21   ;;  %s32_s17 = sadd.s32 1, %s1846_s20 }
  0x6b   : > { %s29_s29 = ssub.s32 %s1850_s21, %s2035_s14  ;;  %p39_p8 = scmp.ne.s32.totalorder %s1846_s20, %s1842_s19 }
  0x6c   : > { %p30_p4 = scmp.eq.s32.totalorder %s29_s29, 0  ;;  %p40_p13 = scmp.eq.s32.totalorder %s1850_s21, 0 }
  0x6d   : > { %p1565_p6 = scmp.lt.s32.totalorder %s1850_s21, 2  ;;  %p2308_p3 = scmp.eq.s32.totalorder %s1916_s22, 1 }
  0x6e   : > { %s2045_s30 = scalar_select %p30_p4, %s1846_s20, %s32_s17  }
  0x6f   : > { %p41_p10 = por %p40_p13, %p39_p8  ;;  %p2049_p5 = por %p2308_p3, %p39_p8 }
  0x70   : > { %s223_s9 = sand.u32 1, %s1846_s20   ;;  %s1415_s10 = sshll.u32 %s1850_s21, 8 }
  0x71   : > { %s2055_s8 = sshll.u32 %s223_s9, 4  ;;  %s2310_s0 = sld [smem:[#allocation17_spill]] }
  0x72   : > { %s227_s15 = scalar_lea.vmem [#allocation2], %s2055_s8  ;;  %p2063_p11 = pnand %p1565_p6, %p41_p10 }
  0x73   : > { %s234_s16 = sshll.u32 %s227_s15, 4  ;;  %s2072_s17 = scalar_lea.hbm %s2284_s1, %s1415_s10  ;;  %s2067_s16 = int_to_ptr.vmem [resolvable:$true] %s234_s16 }
  0x74   : > { %s2074_s11 = scalar_lea.sflag [#allocation3], %s223_s9  ;;  %p1714_p9 = pneg %p2063_p11 }
  0x77   : > { %s2060_s13 = scalar_lea.hbm %s2310_s0, %s1415_s10  ;;  %s1717_s27 = scalar_lea.hbm %s2310_s0, 512 }
  0x78   : > { %s1712_s12 = scalar_lea.hbm %s2060_s13, 256  ;;  %p1718_p1 = scmp.lt.u32.totalorder %s2060_s13, %s2310_s0 }
  0x79   : > { %p1713_p7 = scmp.ne.s32.totalorder %s2060_s13, %s1712_s12  ;;  %p1719_p2 = scmp.lt.u32.totalorder %s1717_s27, %s1712_s12 }
  0x7a   : > { %p1721_p8 = scmp.lt.u32.totalorder %s1712_s12, %s2060_s13 }
  0x7b   : > { %p1715_p12 = pnand %p1714_p9, %p1713_p7  ;;  %p1720_p4 = por %p1719_p2, %p1718_p1 }
  0x7d   : > { %p1716_p0 = pneg %p1715_p12  ;;  %p1722_p13 = por %p1721_p8, %p1720_p4 }
  0x7f   : > { %p1723_p6 = pnand %p1722_p13, %p1716_p0 }
  0x81   : > { %1726 = shalt.err (!%p1723_p6)
}
  0x82   : > { %s1727_s9 = scalar_lea.vmem %s2067_s16, 256  ;;  %s1857_s23 = smov [#allocation2]  }
  0x83   : > { %p1728_p10 = scmp.ne.s32.totalorder %s2067_s16, %s1727_s9  ;;  %s1732_s10 = sshll.u32 %s1857_s23, 4  ;;  %s1733_s10 = int_to_ptr.vmem [resolvable:$false] %s1732_s10 }
  0x84   : > { %s1734_s2 = scalar_lea.vmem %s1733_s10, 512  ;;  %p1735_p12 = scmp.lt.s32.totalorder %s2067_s16, %s1733_s10 }
  0x85   : > { %p1730_p3 = pnand %p1728_p10, %p1714_p9  ;;  %p1736_p1 = scmp.lt.s32.totalorder %s1734_s2, %s1727_s9 }
  0x87   : > { %p1731_p7 = pneg %p1730_p3  ;;  %p1737_p2 = por %p1736_p1, %p1735_p12 }
  0x89   : > { %p1738_p4 = pnand %p1737_p2, %p1731_p7 }
  0x8b   : > { %1741 = shalt.err (!%p1738_p4)
}
  0x8c   : > { %s2312_s3 = smov 8   ;;  %s2313_s27 = smov 128  }
  0x8d   : > { %1554 = dma.hbm_to_vmem [thread:$0]  (!%p2063_p11), %s2060_s13, 256, %s2067_s16, %s2074_s11, %s2313_s27, %s2313_s27, %s2312_s3  }
  0x8e   : > { %s248_s28 = scalar_lea.vmem [#allocation5], %s2055_s8  ;;  %s244_s12 = sand.u32 1, %s1850_s21  }
  0x8f   : > { %s255_s29 = sshll.u32 %s248_s28, 4  ;;  %s2109_s15 = scalar_lea.sflag [#allocation6], %s244_s12  ;;  %s2107_s29 = int_to_ptr.vmem [resolvable:$true] %s255_s29 }
  0x90   : > { %s1742_s9 = scalar_lea.hbm %s2072_s17, 256  ;;  %s1747_s2 = scalar_lea.hbm %s2284_s1, 512 }
  0x91   : > { %p1743_p0 = scmp.ne.s32.totalorder %s2072_s17, %s1742_s9  ;;  %p1748_p6 = scmp.lt.u32.totalorder %s2072_s17, %s2284_s1 }
  0x92   : > { %p1749_p10 = scmp.lt.u32.totalorder %s1747_s2, %s1742_s9  ;;  %p1751_p7 = scmp.lt.u32.totalorder %s1742_s9, %s2072_s17 }
  0x93   : > { %p1745_p8 = pnand %p1743_p0, %p1714_p9 }
  0x94   : > { %p1750_p3 = por %p1749_p10, %p1748_p6 }
  0x95   : > { %p1746_p13 = pneg %p1745_p8 }
  0x96   : > { %p1752_p12 = por %p1751_p7, %p1750_p3 }
  0x98   : > { %p1753_p1 = pnand %p1752_p12, %p1746_p13 }
  0x9a   : > { %1756 = shalt.err (!%p1753_p1)
}
  0x9b   : > { %s1757_s8 = scalar_lea.vmem %s2107_s29, 256  ;;  %s1858_s13 = smov [#allocation5]  }
  0x9c   : > { %p1758_p2 = scmp.ne.s32.totalorder %s2107_s29, %s1757_s8  ;;  %s1762_s16 = sshll.u32 %s1858_s13, 4  ;;  %s1763_s16 = int_to_ptr.vmem [resolvable:$false] %s1762_s16 }
  0x9d   : > { %s1764_s0 = scalar_lea.vmem %s1763_s16, 512  ;;  %p1765_p8 = scmp.lt.s32.totalorder %s2107_s29, %s1763_s16 }
  0x9e   : > { %p1760_p4 = pnand %p1758_p2, %p1714_p9  ;;  %p1766_p6 = scmp.lt.s32.totalorder %s1764_s0, %s1757_s8 }
  0xa0   : > { %p1761_p0 = pneg %p1760_p4  ;;  %p1767_p10 = por %p1766_p6, %p1765_p8 }
  0xa2   : > { %p1768_p3 = pnand %p1767_p10, %p1761_p0 }
  0xa4   : > { %1771 = shalt.err (!%p1768_p3)
}
  0xa5   : > { %1557 = dma.hbm_to_vmem [thread:$0]  (!%p2063_p11), %s2072_s17, 256, %s2107_s29, %s2109_s15, %s2313_s27, %s2313_s27, %s2312_s3  }
  0xa6   : > { %p2314_p9 = scmp.ne.s32.totalorder %s2302_s26, 0 }
  0xa7   : > { %s2141_s4 = sand.u32 (!%p2314_p9), 1, %s1842_s19   ;;  %p2315_p13 = scmp.ne.s32.totalorder (!%p2314_p9), %s2300_s24, 0 }
  0xa8   : > { %267 = sbr.rel (%p2314_p9) target bundleno = 1298 (0x512), region = 40  ;;  %s2144_s11 = sshll.u32 (!%p2314_p9), %s2141_s4, 4 }
  0xa9   : > { %s270_s6 = scalar_lea.sflag (!%p2314_p9), [#allocation3], %s2141_s4  ;;  %s273_s28 = scalar_lea.vmem (!%p2314_p9), [#allocation2], %s2144_s11 }
  0xaf   : > { %1817 = dma.done.wait (%p2315_p13), %s270_s6, 256  }
  0xb0   : > { %1819 = vsyncadd (%p2315_p13), %s270_s6, 4294967040  ;;  %s278_s26 = sand.u32 1, %s1916_s22   ;;  %s282_s3 = scalar_lea.vmem [#allocation5], %s2144_s11 }
  0xb1   : > { %s279_s17 = scalar_lea.sflag [#allocation6], %s278_s26 }
  0xb2   : > { %1821 = dma.done.wait (%p2315_p13), %s279_s17, 256  }
  0xb3   : > { %1823 = vsyncadd (%p2315_p13), %s279_s17, 4294967040  ;;  %p2316_p11 = scmp.eq.s32.totalorder %s1916_s22, 0 }
  0xb5   : > { %1825 = dma.done.wait (%p2316_p11), [#allocation6], 256   ;;  %p2317_p7 = pmov %p2316_p11 }
  0xb7   : > { %1827 = vsyncadd (%p2317_p7), [#allocation6], 4294967040  ;;  %p2318_p12 = pmov %p2317_p7 }
  0xb8   : > { %p2319_p1 = pmov %p2317_p7 }
  0xb9   : > { %1829 = dma.done.wait (%p2318_p12), [#allocation9], 512  }
  0xba   : > { %1831 = vsyncadd (%p2319_p1), [#allocation9], 4294966784  ;;  %vm335_vm0 = vcmask 130048   ;;  %v417_v0 = vld [vmem:[#allocation8] sm:$0xff]  ;;  %v418_v1 = vld [vmem:[#allocation8 + $0x8] sm:$0xff]  ;;  %v1859_v10 = vmov 0.0  }
  0xbb   : > { %v333_v2 = vld [vmem:[#allocation7] sm:$0xff]  ;;  %v1511_v3 = vpack.c.bf16 %v418_v1, %v417_v0  ;;  %v334_v4 = vld [vmem:[#allocation7 + $0x8] sm:$0xff]  ;;  %vm1860_vm1 = vmmov 0   ;;  %vm577_vm2 = vcmask 261120   ;;  %s1861_s24 = smov 96   ;;  %vm654_vm3 = vcmask 64512  }
  0xbc   : > { %v331_v5 = vld [vmem:[%s282_s3] sm:$0xff]  ;;  %v1507_v6 = vpack.c.bf16 %v334_v4, %v333_v2  ;;  %v332_v8 = vld [vmem:[%s282_s3 + $0x8] sm:$0xff]  ;;  %s325_s27 = scalar_lea.vmem [#allocation11], %s2144_s11  ;;  %s1417_s12 = sshll.u32 %s1916_s22, 8 }
  0xbd   : > { %1457 = vmatprep.mubr.msk.f32.mxu1 %vm335_vm0, %v331_v5  ;;  %v329_v7 = vld [vmem:[%s273_s28] sm:$0xff]  ;;  %1512 = vmatprep.subr.bf16.mxu1 %v1511_v3  ;;  %v330_v9 = vld [vmem:[%s273_s28 + $0x8] sm:$0xff]  ;;  %s1248_s29 = sshll.u32 %s325_s27, 4  ;;  %s2238_s23 = scalar_lea.hbm %s2288_s5, %s1417_s12  ;;  %s2233_s29 = int_to_ptr.vmem [resolvable:$true] %s1248_s29 }
  0xbe   : > { %1450 = vmatprep.mubr.msk.f32.mxu0 %vm335_vm0, %v329_v7  ;;  %1514 = vmatpush3.bf16.msra.mxu1 %v1511_v3  ;;  %v500_v11 = vld [vmem:[#allocation10] sm:$0xff]  ;;  %v501_v12 = vld [vmem:[#allocation10 + $0x8] sm:$0xff]  ;;  %s1235_s10 = scalar_lea.sflag [#allocation4], %s2141_s4  ;;  %s1772_s2 = scalar_lea.vmem %s2233_s29, 256 }
  0xbf   : > { %1508 = vmatprep.subr.bf16.mxu0 %v1507_v6  ;;  %1467 = vmatprep.subr.mxu1 %v1859_v10  ;;  %v1515_v13 = vpack.c.bf16 %v501_v12, %v500_v11  ;;  %p1773_p2 = scmp.ne.s32.totalorder %s2233_s29, %s1772_s2  ;;  %s1862_s22 = smov [#allocation11]  }
  0xc0   : > { %1510 = vmatpush3.bf16.msra.mxu0 %v1507_v6  ;;  %s1776_s8 = sshll.u32 %s1862_s22, 4  ;;  %s1777_s8 = int_to_ptr.vmem [resolvable:$false] %s1776_s8 }
  0xc1   : > { %1458 = vmatmul.mubr.msk.f32.vlgmr.msra.gmra.mrb[0].mxu1 %vm335_vm0, %v332_v8  ;;  %1516 = vmatprep.subr.bf16.mxu0 %v1515_v13  ;;  %p1774_p4 = pnand %p1773_p2, %p2049_p5  ;;  %s1778_s13 = scalar_lea.vmem %s1777_s8, 512 }
  0xc2   : > { %1469 = vmatprep.mubr.msk.f32.mxu1 %vm1860_vm1, %v1859_v10  ;;  %p1779_p8 = scmp.lt.s32.totalorder %s2233_s29, %s1777_s8  ;;  %p1780_p6 = scmp.lt.s32.totalorder %s1778_s13, %s1772_s2 }
  0xc3   : > { %1451 = vmatmul.mubr.msk.f32.vlgmr.msra.gmra.mrb[0].mxu0 %vm335_vm0, %v330_v9  ;;  %p1775_p0 = pneg %p1774_p4 }
  0xc4   : > { %1464 = vmatprep.mubr.msk.f32.mxu0 %vm335_vm0, %v331_v5  ;;  %1518 = vmatpush3.bf16.msra.mxu0 %v1515_v13  ;;  %p1781_p10 = por %p1780_p6, %p1779_p8 }
  0xc5   : > { %1472 = vmatprep.subr.mxu0 %v1859_v10 }
  0xc6   : > { %p1782_p3 = pnand %p1781_p10, %p1775_p0 }
  0xc7   : > { %1465 = vmatmul.mubr.msk.f32.vlgmr.msra.gmra.mrb[2].mxu0 %vm335_vm0, %v332_v8 }
  0xc8   : > { %1474 = vmatprep.mubr.msk.f32.mxu0 %vm1860_vm1, %v1859_v10 }
 0x194   : > { %v1459_v14 = vpop.f32.mrb[0].mxu1 }
 0x195   : > { %995 = vrot.lane.b32.xlu1 %v1459_v14, %s1861_s24  ;;  %v491_v15 = vpop.f32.mrb[1].mxu1 }
 0x196   : > { %v1452_v16 = vpop.f32.mrb[0].mxu0  ;;  %668 = vrot.lane.b32.xlu0 %v491_v15, %s1861_s24  ;;  %1468 = vmatpush3.xpose.msk.msra.mxu1 %vm577_vm2, %v491_v15 }
 0x197   : > { %v408_v17 = vpop.f32.mrb[1].mxu0  ;;  %1477 = vmatprep.subr.mxu1 %v1859_v10 }
 0x199   : > { %993 = vrot.lane.b32.xlu1 %v1452_v16, %s1861_s24  ;;  %1470 = vmatmul.mubr.msk.f32.vlgmr.msra.gmra.mrb[2].mxu1 %vm577_vm2, %v408_v17 }
 0x19a   : > { %666 = vrot.lane.b32.xlu0 %v408_v17, %s1861_s24  ;;  %1479 = vmatprep.mubr.msk.f32.mxu1 %vm1860_vm1, %v1859_v10  ;;  %v2187_v18 = vpop.f32.mrb[2].mxu0 }
 0x19b   : > { %v2189_v19 = vpop.f32.mrb[3].mxu0 }
 0x207   : > { %v996_v22 = vpop.permute.xlu1 %995 }
 0x208   : > { %v669_v20 = vpop.permute.xlu0 %668 }
 0x209   : > { %1473 = vmatpush3.xpose.msk.msra.mxu0 %vm577_vm2, %v669_v20 }
 0x20a   : > { %1487 = vmatprep.subr.mxu0 %v1859_v10 }
 0x20b   : > { %v994_v23 = vpop.permute.xlu1 %993 }
 0x20c   : > { %v667_v21 = vpop.permute.xlu0 %666 }
 0x20d   : > { %1475 = vmatmul.mubr.msk.f32.vlgmr.msra.gmra.mrb[4].mxu0 %vm577_vm2, %v667_v21 }
 0x20e   : > { %1488 = vmatpush3.xpose.msk.msra.mxu0 %vm577_vm2, %v1459_v14  ;;  %1489 = vmatprep.mubr.msk.f32.mxu0 %vm1860_vm1, %v1859_v10 }
 0x20f   : > { %1492 = vmatprep.subr.mxu0 %v1859_v10 }
 0x211   : > { %1490 = vmatmul.mubr.msk.f32.vlgmr.msra.gmra.mrb[6].mxu0 %vm577_vm2, %v1452_v16 }
 0x212   : > { %1493 = vmatpush3.xpose.msk.msra.mxu0 %vm577_vm2, %v996_v22  ;;  %1494 = vmatprep.mubr.msk.f32.mxu0 %vm1860_vm1, %v1859_v10 }
 0x215   : > { %1495 = vmatmul.mubr.msk.f32.vlgmr.msra.gmra.mrb[8].mxu0 %vm577_vm2, %v994_v23 }
 0x26c   : > { %v650_v24 = vpop.f32.mrb[2].mxu1 }
 0x26d   : > { %v1471_v25 = vpop.f32.mrb[3].mxu1  ;;  %v655_v26 = vsel %vm654_vm3, %v650_v24, -inf }
 0x26e   : > { %656 = vmax.xlane.f32.xlu1 %v655_v26 }
 0x2e0   : > { %v740_v27 = vpop.f32.mrb[4].mxu0 }
 0x2e1   : > { %v1476_v28 = vpop.f32.mrb[5].mxu0  ;;  %v744_v29 = vsel %vm654_vm3, %v740_v27, -inf }
 0x2e2   : > { %745 = vmax.xlane.f32.xlu0 %v744_v29 }
 0x2e4   : > { %v978_v30 = vpop.f32.mrb[6].mxu0 }
 0x2e5   : > { %v1491_v31 = vpop.f32.mrb[7].mxu0  ;;  %v982_v35 = vsel %vm654_vm3, %v978_v30, -inf }
 0x2e8   : > { %v1067_v32 = vpop.f32.mrb[8].mxu0 }
 0x2e9   : > { %v1496_v33 = vpop.f32.mrb[9].mxu0  ;;  %v1071_v34 = vsel %vm654_vm3, %v1067_v32, -inf }
 0x2ea   : > { %1072 = vmax.xlane.f32.xlu0 %v1071_v34 }
 0x2ee   : > { %983 = vmax.xlane.f32.xlu0 %v982_v35 }
 0x2fb   : > { %v657_v36 = vpop.xlane.xlu1 %656 }
 0x2fc   : > { %v658_v37 = vsub.f32 %v650_v24, %v657_v36 }
 0x2fe   : > { %v659_v38 = vmul.f32 1.442695, %v658_v37 }
 0x300   : > { %1612 = vpow2.f32 %v659_v38 }
 0x30a   : > { %v1613_v39 = vpop.eup %1612 }
 0x30b   : > { %v661_v40 = vsel %vm654_vm3, %v1613_v39, 0.0 }
 0x30c   : > { %662 = vadd.xlane.f32.xlu0 %v661_v40 }
 0x36f   : > { %v746_v41 = vpop.xlane.xlu0 %745 }
 0x370   : > { %v747_v42 = vsub.f32 %v740_v27, %v746_v41 }
 0x372   : > { %v748_v43 = vmul.f32 1.442695, %v747_v42 }
 0x374   : > { %1614 = vpow2.f32 %v748_v43 }
 0x377   : > { %v1073_v44 = vpop.xlane.xlu0 %1072 }
 0x378   : > { %v1074_v45 = vsub.f32 %v1067_v32, %v1073_v44 }
 0x37a   : > { %v1075_v46 = vmul.f32 1.442695, %v1074_v45 }
 0x37b   : > { %v984_v47 = vpop.xlane.xlu0 %983 }
 0x37c   : > { %1616 = vpow2.f32 %v1075_v46  ;;  %v985_v48 = vsub.f32 %v978_v30, %v984_v47 }
 0x37e   : > { %v1615_v49 = vpop.eup %1614  ;;  %v986_v50 = vmul.f32 1.442695, %v985_v48 }
 0x37f   : > { %v750_v51 = vsel %vm654_vm3, %v1615_v49, 0.0 }
 0x380   : > { %1618 = vpow2.f32 %v986_v50  ;;  %751 = vadd.xlane.f32.xlu1 %v750_v51 }
 0x386   : > { %v1617_v52 = vpop.eup %1616 }
 0x387   : > { %v1077_v53 = vsel %vm654_vm3, %v1617_v52, 0.0 }
 0x388   : > { %1078 = vadd.xlane.f32.xlu1 %v1077_v53 }
 0x38a   : > { %v1619_v54 = vpop.eup %1618 }
 0x38b   : > { %v988_v55 = vsel %vm654_vm3, %v1619_v54, 0.0 }
 0x38c   : > { %989 = vadd.xlane.f32.xlu0 %v988_v55 }
 0x399   : > { %756 = vrot.lane.b32.xlu1 %v2189_v19, %s1861_s24  ;;  %v663_v57 = vpop.xlane.xlu0 %662 }
 0x3a2   : > { %1083 = vrot.lane.b32.xlu0 %v2187_v18, %s1861_s24 }
 0x40d   : > { %v752_v56 = vpop.xlane.xlu1 %751 }
 0x40e   : > { %1620 = vrcp.f32 %v752_v56 }
 0x40f   : > { %1622 = vrcp.f32 %v663_v57 }
 0x415   : > { %v1079_v58 = vpop.xlane.xlu1 %1078 }
 0x416   : > { %1624 = vrcp.f32 %v1079_v58 }
 0x418   : > { %v1621_v59 = vpop.eup %1620 }
 0x419   : > { %v754_v60 = vmul.f32 %v1621_v59, %v1615_v49  ;;  %v757_v61 = vpop.permute.xlu1 %756  ;;  %v990_v62 = vpop.xlane.xlu0 %989 }
 0x41a   : > { %1478 = vmatpush3.msra.mxu1 %v757_v61  ;;  %v1623_v63 = vpop.eup %1622  ;;  %1626 = vrcp.f32 %v990_v62 }
 0x41b   : > { %1480 = vmatmul.mubr.msk.f32.vlgmr.msra.gmra.mrb[4].mxu1 %vm654_vm3, %v754_v60  ;;  %1482 = vmatprep.subr.mxu1 %v1859_v10  ;;  %v665_v0 = vmul.f32 %v1623_v63, %v1613_v39 }
 0x41c   : > { %1483 = vmatpush3.msra.mxu1 %v2189_v19  ;;  %1484 = vmatprep.mubr.msk.f32.mxu1 %vm1860_vm1, %v1859_v10 }
 0x41d   : > { %1497 = vmatprep.subr.mxu1 %v1859_v10  ;;  %v1084_v2 = vpop.permute.xlu0 %1083 }
 0x420   : > { %v1625_v1 = vpop.eup %1624 }
 0x421   : > { %v1081_v3 = vmul.f32 %v1625_v1, %v1617_v52 }
 0x423   : > { %1485 = vmatmul.mubr.msk.f32.vlgmr.msra.gmra.mrb[4].mxu1 %vm654_vm3, %v665_v0 }
 0x424   : > { %1498 = vmatpush3.msra.mxu1 %v1084_v2  ;;  %1499 = vmatprep.mubr.msk.f32.mxu1 %vm1860_vm1, %v1859_v10  ;;  %v1627_v4 = vpop.eup %1626 }
 0x425   : > { %1502 = vmatprep.subr.mxu1 %v1859_v10  ;;  %v992_v5 = vmul.f32 %v1627_v4, %v1619_v54 }
 0x427   : > { %1500 = vmatmul.mubr.msk.f32.vlgmr.msra.gmra.mrb[6].mxu1 %vm654_vm3, %v1081_v3 }
 0x428   : > { %1503 = vmatpush3.msra.mxu1 %v2187_v18  ;;  %1504 = vmatprep.mubr.msk.f32.mxu1 %vm1860_vm1, %v1859_v10 }
 0x42f   : > { %1505 = vmatmul.mubr.msk.f32.vlgmr.msra.gmra.mrb[6].mxu1 %vm654_vm3, %v992_v5 }
 0x4f6   : > { %v901_v6 = vpop.f32.mrb[4].mxu1 }
 0x4f7   : > { %905 = vst.msk [vmem:[%s325_s27] sm:$0xff] %vm577_vm2, %v901_v6  ;;  %v1486_v7 = vpop.f32.mrb[5].mxu1 }
 0x502   : > { %v1228_v8 = vpop.f32.mrb[6].mxu1 }
 0x503   : > { %1409 = vst.msk [vmem:[%s325_s27 + $0x8] sm:$0xff] %vm577_vm2, %v1228_v8  ;;  %v1506_v9 = vpop.f32.mrb[7].mxu1 }
 0x504   : > { %1785 = shalt.err (!%p1782_p3)
}
 0x505   : > { %s1786_s16 = scalar_lea.hbm %s2238_s23, 256  ;;  %s1790_s6 = scalar_lea.hbm %s2288_s5, 512 }
 0x506   : > { %p1787_p9 = scmp.ne.s32.totalorder %s2238_s23, %s1786_s16  ;;  %p1791_p7 = scmp.lt.u32.totalorder %s2238_s23, %s2288_s5 }
 0x507   : > { %p1792_p12 = scmp.lt.u32.totalorder %s1790_s6, %s1786_s16  ;;  %p1794_p2 = scmp.lt.u32.totalorder %s1786_s16, %s2238_s23 }
 0x508   : > { %p1788_p13 = pnand %p1787_p9, %p2049_p5 }
 0x509   : > { %p1793_p1 = por %p1792_p12, %p1791_p7 }
 0x50a   : > { %p1789_p11 = pneg %p1788_p13 }
 0x50b   : > { %p1795_p4 = por %p1794_p2, %p1793_p1 }
 0x50d   : > { %p1796_p0 = pnand %p1795_p4, %p1789_p11 }
 0x50f   : > { %1799 = shalt.err (!%p1796_p0)
}
 0x510   : > { %s1863_s17 = smov 128   ;;  %s1864_s3 = smov 8  }
 0x511   : > { %1539 = dma.vmem_to_hbm [thread:$0]  (%p2049_p5), %s2233_s29, 256, %s2238_s23, %s1235_s10, %s1863_s17, %s1863_s17, %s1864_s3  }
 0x512 PF: > { %s1263_s24 = sand.u32 1, %s1838_s18   ;;  %p2320_p8 = scmp.ne.s32.totalorder %s2301_s25, 0 }
 0x513   : > { %p2321_p6 = scmp.ge.s32.totalorder %s1850_s21, 2  ;;  %s1264_s27 = scalar_lea.sflag [#allocation4], %s1263_s24 }
 0x515   : > { %p1559_p10 = pnand %p2321_p6, %p2320_p8 }
 0x517   : > { %1833 = dma.done.wait (!%p1559_p10), %s1264_s27, 256  }
 0x518   : > { %1835 = vsyncadd (!%p1559_p10), %s1264_s27, 4294967040  ;;  %p22_p3 = scmp.ge.s32.totalorder %s2035_s14, 4   ;;  %s2322_s18 = smov %s1842_s19 }
 0x519   : > { %s2323_s19 = smov %s1846_s20  ;;  %s2324_s20 = smov %s2045_s30 }
 0x51a   : > { %s2325_s21 = smov %s2035_s14  ;;  %24 = sbr.rel (!%p22_p3) target bundleno = 13 (0xd), region = 111 }
 0x521   :  { %1269 = vsyncpa [#allocation3], 1 }
 0x522   :  { %1271 = vsyncpa [#allocation3 + $0x1], 1 }
 0x523   :  { %1272 = vsyncpa [#allocation6], 1 }
 0x524   :  { %1274 = vsyncpa [#allocation6 + $0x1], 1 }
 0x525   :  { %1275 = vsyncpa [#allocation9], 1 }
 0x526   :  { %1276 = vsyncpa [#allocation4], 1 }
 0x527   :  { %1278 = vsyncpa [#allocation4 + $0x1], 1 }

</bundles_post_ra>
